<compile_context>
chip_gen: v7x
topology: tpu7x:2x2x1
jax: 0.10.0
libtpu: 0.0.40
codegen_flags: <defaults>
</compile_context>

<pallas_src>
import jax
import jax.numpy as jnp
from jax.experimental import pallas as pl
from jax.experimental.pallas import tpu as pltpu


def _round_up(x, m):
    return ((x + m - 1) // m) * m


_VMEM_BUDGET = 24 * 1024 * 1024   # conservative target for double-buffered tiles
_VMEM_LIMIT = 32 * 1024 * 1024    # > v5e's 16 MiB scoped default, <= physical on v5e/v6e/v7x


def _make_qstate_kernel(n_act, transpose_out):
    def kernel(obs_ref, w_ref, b_ref, out_ref):
        # Q(s, .) = obs @ W + b  -- MXU matmul, f32 accumulation (matches f32 nn.Linear).
        q = jnp.dot(obs_ref[...], w_ref[...], preferred_element_type=jnp.float32)
        q = q + b_ref[...]                     # (TB, A_pad) + (1, A_pad)
        if transpose_out:
            # Drop the zero-padded action columns and store a lane-dense
            # (n_act, TB) slab: only the true bytes are written back to HBM,
            # and the stores stay unmasked full-lane vst.
            out_ref[...] = q.T[:n_act, :]
        else:
            # act_dim already a multiple of 128: store directly, no padding.
            out_ref[...] = q
    return kernel


def _choose_batch_tile(B, D, A, A_pad, block_b):
    """Pick (TB, B_pad).  TB is a multiple of 128 whenever the grid has more
    than one step (lane-dense transposed output blocks) and a multiple of 8
    otherwise.  Prefers an even step count (v7x two-TensorCore balance), caps
    zero-row padding, then shrinks TB until the double-buffered tiles fit the
    VMEM budget (Pallas double-buffers even the constant-index W/b blocks)."""
    def vmem_est(tb):
        return 2 * (tb * D * 4                      # obs tile (f32)
                    + D * A_pad * 4                 # resident weight tile
                    + 8 * A_pad * 4                 # bias tile (>= 8 sublanes in VMEM)
                    + A * _round_up(tb, 128) * 4)   # output tile

    B8 = _round_up(B, 8)
    if B8 <= 1024:
        TB, B_pad = B8, B8                          # single grid step, zero padded rows
    else:
        cap = max(128, (block_b // 128) * 128)
        n = -(-B // cap)                            # fewest steps allowed by block_b
        n = (n + (n % 2)) if n > 1 else 2           # even step count for v7x balance
        TB = _round_up(-(-B // n), 128)
        B_pad = n * TB
    while vmem_est(TB) > _VMEM_BUDGET and TB > 128:
        TB = max(128, _round_up(TB // 2, 128))
        B_pad = _round_up(B, TB)
    return TB, B_pad


def q_function_forward(observation, W, b, action, *, block_b=2048):
    """observation: (B, obs_dim) f32 (or (B,) when obs_dim == 1);
    W: (obs_dim, act_dim) f32; b: (act_dim,) f32; action: (B,) int.
    Returns (q_selected (B,) f32, q_all (B, act_dim) f32)."""
    if observation.ndim == 1:                       # n_obs == 1 branch of forward_state
        observation = observation[:, None]
    B, D = observation.shape
    A = W.shape[1]
    A_pad = _round_up(A, 128)                       # minimum lane-dense rhs width (not 256)
    transpose_out = (A != A_pad)                    # small act_dim -> densified (A, B_pad) output

    TB, B_pad = _choose_batch_tile(B, D, A, A_pad, block_b)

    obs_p = observation.astype(jnp.float32)
    if B_pad != B:
        obs_p = jnp.pad(obs_p, ((0, B_pad - B), (0, 0)))
    W_p = jnp.pad(W.astype(jnp.float32), ((0, 0), (0, A_pad - A)))
    b_p = jnp.pad(b.astype(jnp.float32), (0, A_pad - A)).reshape(1, A_pad)

    grid = (B_pad // TB,)
    if transpose_out:
        out_shape = jax.ShapeDtypeStruct((A, B_pad), jnp.float32)
        out_spec = pl.BlockSpec((A, TB), lambda i: (0, i))
        out_bytes = A * B_pad * 4
    else:
        out_shape = jax.ShapeDtypeStruct((B_pad, A), jnp.float32)
        out_spec = pl.BlockSpec((TB, A), lambda i: (i, 0))
        out_bytes = B_pad * A * 4

    cost = pl.CostEstimate(
        flops=2 * B_pad * D * A_pad,
        transcendentals=0,
        bytes_accessed=obs_p.size * 4 + W_p.size * 4 + b_p.size * 4 + out_bytes,
    )

    out = pl.pallas_call(
        _make_qstate_kernel(A, transpose_out),
        out_shape=out_shape,
        grid_spec=pltpu.PrefetchScalarGridSpec(
            num_scalar_prefetch=0,
            grid=grid,
            in_specs=[
                pl.BlockSpec((TB, D), lambda i: (i, 0)),      # obs tile: pipelined HBM<->VMEM
                pl.BlockSpec((D, A_pad), lambda i: (0, 0)),   # weights: constant index -> resident
                pl.BlockSpec((1, A_pad), lambda i: (0, 0)),   # bias: resident
            ],
            out_specs=out_spec,
        ),
        compiler_params=pltpu.CompilerParams(
            dimension_semantics=("parallel",),   # independent row tiles -> both v7x TensorCores
            vmem_limit_bytes=_VMEM_LIMIT,
        ),
        cost_estimate=cost,
    )(obs_p, W_p, b_p)

    if transpose_out:
        q_all = out[:, :B].T                     # (B, A); tiny layout pass, fused under jit
    else:
        q_all = out[:B, :]
    # forward(): gather(-1, action).squeeze(-1) -- B*4 bytes, done in the wrapper
    # (fused by XLA) instead of a width-1 masked store inside the kernel.
    act2 = action.reshape(B, 1).astype(jnp.int32)
    q_sel = jnp.take_along_axis(q_all, act2, axis=-1)[:, 0]
    return q_sel, q_all


if __name__ == "__main__":
    key = jax.random.PRNGKey(0)
    k_obs, k_w, k_b, k_a = jax.random.split(key, 4)

    # Small but tiling-exercising shapes: two 1024-row batch tiles (even grid).
    B, obs_dim, act_dim = 2048, 64, 8

    observation = jax.random.normal(k_obs, (B, obs_dim), dtype=jnp.float32)
    # Deterministic synthetic parameters (Linear obs_dim -> act_dim).
    W = jax.random.normal(k_w, (obs_dim, act_dim), dtype=jnp.float32) * 0.1
    b = jax.random.normal(k_b, (act_dim,), dtype=jnp.float32) * 0.1
    action = jax.random.randint(k_a, (B,), 0, act_dim, dtype=jnp.int32)

    fwd = jax.jit(q_function_forward)
    q_sel, q_all = fwd(observation, W, b, action)
    jax.block_until_ready((q_sel, q_all))

    # f32 reference matching the module's Linear semantics.
    q_ref_all = jnp.dot(observation, W, preferred_element_type=jnp.float32,
                        precision=jax.lax.Precision.HIGHEST) + b
    q_ref_sel = jnp.take_along_axis(q_ref_all, action[:, None], axis=-1)[:, 0]

    assert q_all.shape == (B, act_dim)
    assert q_sel.shape == (B,)
    # Loose tolerance only to absorb possible MXU default-precision differences.
    assert jnp.allclose(q_all, q_ref_all, atol=5e-2, rtol=1e-2)
    assert jnp.allclose(q_sel, q_ref_sel, atol=5e-2, rtol=1e-2)

    print("KERNEL_OK")
</pallas_src>

<mosaic_0001>
module attributes {stable_mosaic.version = 11 : i64} {
  func.func private @main(%arg0: i32) attributes {dimension_semantics = [#tpu.dimension_semantics<core_parallel>], iteration_bounds = array<i64: 2>, tpu.core_type = #tpu.core_type<sc_scalar_subcore>, window_params = []} {
    return
  }
}

module attributes {stable_mosaic.version = 11 : i64} {
  func.func private @main(%arg0: i32) attributes {dimension_semantics = [#tpu.dimension_semantics<core_parallel>], iteration_bounds = array<i64: 2>, tpu.core_type = #tpu.core_type<sc_scalar_subcore>, window_params = []} {
    return
  }
}

module attributes {stable_mosaic.version = 11 : i64} {
  func.func @kernel(%arg0: i32, %arg1: memref<1024x64xf32, #tpu.memory_space<vmem>>, %arg2: memref<64x128xf32, #tpu.memory_space<vmem>>, %arg3: memref<1x128xf32, #tpu.memory_space<vmem>>, %arg4: memref<8x1024xf32, #tpu.memory_space<vmem>>) attributes {dimension_semantics = [#tpu.dimension_semantics<parallel>], iteration_bounds = array<i64: 2>, scalar_prefetch = 0 : i64, scratch_operands = 0 : i64, tpu.core_type = #tpu.core_type<tc>, window_params = [{transform_indices = @transform_0, window_bounds = array<i64: 1024, 64>}, {pipeline_mode = #tpu.pipeline_mode<synchronous>, transform_indices = @transform_1, window_bounds = array<i64: 64, 128>}, {pipeline_mode = #tpu.pipeline_mode<synchronous>, transform_indices = @transform_2, window_bounds = array<i64: 1, 128>}, {transform_indices = @transform_3, window_bounds = array<i64: 8, 1024>}]} {
    %c0 = arith.constant 0 : index
    %c0_0 = arith.constant 0 : index
    %0 = vector.load %arg1[%c0, %c0_0] : memref<1024x64xf32, #tpu.memory_space<vmem>>, vector<1024x64xf32>
    %c0_1 = arith.constant 0 : index
    %c0_2 = arith.constant 0 : index
    %1 = vector.load %arg2[%c0_1, %c0_2] : memref<64x128xf32, #tpu.memory_space<vmem>>, vector<64x128xf32>
    %cst = arith.constant dense<0.000000e+00> : vector<1024x128xf32>
    %2 = tpu.matmul %0, %1, %cst {dimension_numbers = #tpu.dot_dimension_numbers<[1], [0], [0], [1], [0, 0, 1, 1], [], []>} : vector<1024x64xf32>, vector<64x128xf32>, vector<1024x128xf32> -> vector<1024x128xf32>
    %c0_3 = arith.constant 0 : index
    %c0_4 = arith.constant 0 : index
    %3 = vector.load %arg3[%c0_3, %c0_4] : memref<1x128xf32, #tpu.memory_space<vmem>>, vector<1x128xf32>
    %4 = vector.broadcast %3 : vector<1x128xf32> to vector<1024x128xf32>
    %5 = arith.addf %2, %4 : vector<1024x128xf32>
    %6 = tpu.transpose %5, [1, 0] : vector<1024x128xf32> -> vector<128x1024xf32>
    %7 = vector.extract_strided_slice %6 {offsets = [0, 0], sizes = [8, 1024], strides = [1, 1]} : vector<128x1024xf32> to vector<8x1024xf32>
    %c0_5 = arith.constant 0 : index
    %c0_6 = arith.constant 0 : index
    %8 = vector.load %arg4[%c0_5, %c0_6] : memref<8x1024xf32, #tpu.memory_space<vmem>>, vector<8x1024xf32>
    tpu.vector_store %arg4[%c0_5, %c0_6], %7 {strides = array<i32>} : memref<8x1024xf32, #tpu.memory_space<vmem>>, vector<8x1024xf32>,
    return
  }
  func.func @transform_0(%arg0: i32) -> (i32, i32) {
    %c0_i32 = arith.constant 0 : i32
    %c0_i32_0 = arith.constant 0 : i32
    return %arg0, %c0_i32 : i32, i32
  }
  func.func @transform_1(%arg0: i32) -> (i32, i32) {
    %c0_i32 = arith.constant 0 : i32
    %c0_i32_0 = arith.constant 0 : i32
    %c0_i32_1 = arith.constant 0 : i32
    return %c0_i32, %c0_i32_0 : i32, i32
  }
  func.func @transform_2(%arg0: i32) -> (i32, i32) {
    %c0_i32 = arith.constant 0 : i32
    %c0_i32_0 = arith.constant 0 : i32
    %c0_i32_1 = arith.constant 0 : i32
    return %c0_i32, %c0_i32_0 : i32, i32
  }
  func.func @transform_3(%arg0: i32) -> (i32, i32) {
    %c0_i32 = arith.constant 0 : i32
    %c0_i32_0 = arith.constant 0 : i32
    return %c0_i32, %arg0 : i32, i32
  }
}

</mosaic_0001>

<bundles_post_ra>
// kernel: q_function_forward.1
= control target key start
LH: loop header
LB: loop body
LE: loop exit
PB: predicated region body
PF: predicated region fallthrough
CT: control target
= control target key end

     0   :  { %8 = vsyncpa [#allocation3], 0  ;;  %s3200_s0 = inlined_call_operand.vmem [shape: f32[2048,64], index: 0, kind: input, shape index: {}]   ;;  %s3201_s1 = inlined_call_operand.vmem [shape: f32[64,128], index: 1, kind: input, shape index: {}]   ;;  %s3202_s2 = inlined_call_operand.vmem [shape: f32[1,128], index: 2, kind: input, shape index: {}]   ;;  %s3203_s3 = inlined_call_operand.hbm [shape: f32[8,2048], index: 3, kind: output, shape index: {}]  }
   0x1   :  { %10 = vsyncpa [#allocation3 + $0x1], 0  ;;  %s2377_s12 = smov 0   ;;  %s2379_s13 = smov 0  }
   0x2   :  { %s2381_s14 = smov 0   ;;  %s2383_s15 = smov 0  }
   0x3 LB: > { %s2398_s16 = sadd.s32 4294967295, %s2354_s15   ;;  %s1743_s17 = sadd.s32 4294967294, %s2354_s15   ;;  %s2354_s15 = sphi %s2383_s15, %s3231_s15   ;;  %s2350_s14 = sphi %s2381_s14, %s3230_s14   ;;  %s2346_s13 = sphi %s2379_s13, %s3229_s13   ;;  %s2342_s12 = sphi %s2377_s12, %s3228_s12  }
   0x4   : > { %s2402_s18 = sadd.s32 1, %s2354_s15   ;;  %s91_s19 = sadd.s32 1, %s2350_s14 }
   0x5   : > { %s88_s20 = ssub.s32 %s2354_s15, %s2402_s18  ;;  %p101_p0 = scmp.ne.s32.totalorder %s2350_s14, %s2346_s13 }
   0x6   : > { %p89_p1 = scmp.eq.s32.totalorder %s88_s20, 0  ;;  %p102_p2 = scmp.eq.s32.totalorder %s2398_s16, 1 }
   0x7   : > { %p107_p3 = scmp.ne.s32.totalorder %s2346_s13, %s2342_s12  ;;  %p108_p4 = scmp.eq.s32.totalorder %s1743_s17, 1 }
   0x8   : > { %s2413_s21 = scalar_select %p89_p1, %s2350_s14, %s91_s19  }
   0x9   : > { %p2415_p5 = por %p102_p2, %p101_p0  ;;  %p2419_p6 = por %p108_p4, %p107_p3 }
   0xa   : > { %p1746_p7 = scmp.ge.s32.totalorder %s2354_s15, 1  ;;  %p141_p8 = scmp.lt.s32.totalorder %s2354_s15, 3 }
   0xc   : > { %p142_p9 = pnand %p1746_p7, %p141_p8 }
   0xe   : > { %145 = sbr.rel (%p142_p9) target bundleno = 622 (0x26e), region = 32 }
  0x15   : > { %v300_v0 = vld [vmem:[%s3201_s1] sm:$0xff]  ;;  %v301_v1 = vld [vmem:[%s3201_s1 + $0x8] sm:$0xff]  ;;  %v302_v2 = vld [vmem:[%s3201_s1 + $0x10] sm:$0xff]  ;;  %s1748_s30 = sshll.u32 %s2398_s16, 7  ;;  %vm315_vm0 = vcmask 523264   ;;  %s162_s29 = sand.u32 1, %s2346_s13  }
  0x16   : > { %v2229_v3 = vpack.c.bf16 %v301_v1, %v300_v0  ;;  %v303_v4 = vld [vmem:[%s3201_s1 + $0x18] sm:$0xff]  ;;  %p166_p10 = scmp.lt.s32.totalorder %s1748_s30, 255  ;;  %v304_v6 = vld [vmem:[%s3201_s1 + $0x20] sm:$0xff]  ;;  %v305_v7 = vld [vmem:[%s3201_s1 + $0x28] sm:$0xff]  ;;  %s1884_s5 = sshll.u32 %s2398_s16, 10 }
  0x17   : > { %v2233_v5 = vpack.c.bf16 %v303_v4, %v302_v2  ;;  %v2237_v8 = vpack.c.bf16 %v305_v7, %v304_v6  ;;  %v306_v9 = vld [vmem:[%s3201_s1 + $0x30] sm:$0xff]  ;;  %v307_v10 = vld [vmem:[%s3201_s1 + $0x38] sm:$0xff]  ;;  %s3155_s9 = scalar_lea.hbm %s3203_s3, %s1884_s5  ;;  %s2356_s16 = smov [#allocation2]  }
  0x18   : > { %2230 = vmatprep.subr.bf16.mxu0 %v2229_v3  ;;  %s3233_s30 = smov (!%p166_p10, %s1748_s30), 255  ;;  %2245 = vmatprep.subr.bf16.mxu1 %v2229_v3  ;;  %v2241_v12 = vpack.c.bf16 %v307_v10, %v306_v9  ;;  %s2296_s17 = sshll.u32 %s2356_s16, 4  ;;  %s2297_s17 = int_to_ptr.vmem [resolvable:$false] %s2296_s17 }
  0x19   : > { %2232 = vmatpush3.bf16.msra.mxu0 %v2229_v3  ;;  %2249 = vmatpush3.bf16.msra.mxu1 %v2229_v3  ;;  %s1749_s10 = sshll.u32 %s3233_s30, 3  ;;  %s1747_s30 = sshll.u32 %s162_s29, 6 }
  0x1a   : > { %2234 = vmatprep.subr.bf16.mxu0 %v2233_v5  ;;  %2246 = vmatprep.subr.bf16.mxu1 %v2233_v5  ;;  %s2453_s26 = scalar_lea.vmem %s3200_s0, %s1749_s10  ;;  %s3033_s4 = scalar_lea.vmem [#allocation2], %s1747_s30 }
  0x1b   : > { %v172_v11 = vld [vmem:[%s2453_s26] sm:$0xff]  ;;  %v173_v14 = vld [vmem:[%s2453_s26 + $0x8] sm:$0xff]  ;;  %v174_v15 = vld [vmem:[%s2453_s26 + $0x10] sm:$0xff]  ;;  %s1684_s6 = sshll.u32 %s3033_s4, 4  ;;  %s1670_s10 = scalar_lea.sflag [#allocation3], %s162_s29  ;;  %s3157_s6 = int_to_ptr.vmem [resolvable:$true] %s1684_s6 }
  0x1c   : > { %2037 = vmatprep.mubr.msk.f32.mxu0 %vm315_vm0, %v172_v11  ;;  %v236_v13 = vld [vmem:[%s2453_s26 + $0x200] sm:$0xff]  ;;  %v237_v16 = vld [vmem:[%s2453_s26 + $0x208] sm:$0xff]  ;;  %v238_v17 = vld [vmem:[%s2453_s26 + $0x210] sm:$0xff]  ;;  %s2292_s11 = scalar_lea.vmem %s3157_s6, 1024  ;;  %s2298_s19 = scalar_lea.vmem %s2297_s17, 2048 }
  0x1d   : > { %2236 = vmatpush3.bf16.msra.mxu0 %v2233_v5  ;;  %2250 = vmatpush3.bf16.msra.mxu1 %v2233_v5  ;;  %v175_v18 = vld [vmem:[%s2453_s26 + $0x18] sm:$0xff]  ;;  %v176_v19 = vld [vmem:[%s2453_s26 + $0x20] sm:$0xff]  ;;  %v177_v22 = vld [vmem:[%s2453_s26 + $0x28] sm:$0xff]  ;;  %p2293_p11 = scmp.ne.s32.totalorder %s3157_s6, %s2292_s11  ;;  %p2299_p0 = scmp.lt.s32.totalorder %s3157_s6, %s2297_s17 }
  0x1e   : > { %2238 = vmatprep.subr.bf16.mxu0 %v2237_v8  ;;  %2247 = vmatprep.subr.bf16.mxu1 %v2237_v8  ;;  %v239_v20 = vld [vmem:[%s2453_s26 + $0x218] sm:$0xff]  ;;  %v240_v21 = vld [vmem:[%s2453_s26 + $0x220] sm:$0xff]  ;;  %v178_v23 = vld [vmem:[%s2453_s26 + $0x30] sm:$0xff]  ;;  %p2300_p1 = scmp.lt.s32.totalorder %s2298_s19, %s2292_s11 }
  0x1f   : > { %2133 = vmatprep.mubr.msk.f32.mxu1 %vm315_vm0, %v236_v13  ;;  %v241_v24 = vld [vmem:[%s2453_s26 + $0x228] sm:$0xff]  ;;  %v242_v25 = vld [vmem:[%s2453_s26 + $0x230] sm:$0xff]  ;;  %v179_v26 = vld [vmem:[%s2453_s26 + $0x38] sm:$0xff]  ;;  %p2294_p12 = pnand %p2293_p11, %p2415_p5 }
  0x20   : > { %v180_v27 = vld [vmem:[%s2453_s26 + $0x40] sm:$0xff]  ;;  %v243_v28 = vld [vmem:[%s2453_s26 + $0x238] sm:$0xff]  ;;  %v181_v30 = vld [vmem:[%s2453_s26 + $0x48] sm:$0xff]  ;;  %p2301_p2 = por %p2300_p1, %p2299_p0 }
  0x21   : > { %2240 = vmatpush3.bf16.msra.mxu0 %v2237_v8  ;;  %2251 = vmatpush3.bf16.msra.mxu1 %v2237_v8  ;;  %v244_v29 = vld [vmem:[%s2453_s26 + $0x240] sm:$0xff]  ;;  %v182_v31 = vld [vmem:[%s2453_s26 + $0x50] sm:$0xff]  ;;  %v245_v32 = vld [vmem:[%s2453_s26 + $0x248] sm:$0xff]  ;;  %p2295_p13 = pneg %p2294_p12 }
  0x22   : > { %2242 = vmatprep.subr.bf16.mxu0 %v2241_v12  ;;  %2248 = vmatprep.subr.bf16.mxu1 %v2241_v12  ;;  %v246_v33 = vld [vmem:[%s2453_s26 + $0x250] sm:$0xff]  ;;  %v183_v34 = vld [vmem:[%s2453_s26 + $0x58] sm:$0xff]  ;;  %v184_v35 = vld [vmem:[%s2453_s26 + $0x60] sm:$0xff] }
  0x23   : > { %v247_v36 = vld [vmem:[%s2453_s26 + $0x258] sm:$0xff]  ;;  %v248_v37 = vld [vmem:[%s2453_s26 + $0x260] sm:$0xff]  ;;  %v185_v38 = vld [vmem:[%s2453_s26 + $0x68] sm:$0xff]  ;;  %p2302_p3 = pnand %p2301_p2, %p2295_p13 }
  0x24   : > { %v186_v39 = vld [vmem:[%s2453_s26 + $0x70] sm:$0xff]  ;;  %v249_v40 = vld [vmem:[%s2453_s26 + $0x268] sm:$0xff]  ;;  %v187_v42 = vld [vmem:[%s2453_s26 + $0x78] sm:$0xff] }
  0x25   : > { %2244 = vmatpush3.bf16.msra.mxu0 %v2241_v12  ;;  %2252 = vmatpush3.bf16.msra.mxu1 %v2241_v12  ;;  %v250_v41 = vld [vmem:[%s2453_s26 + $0x270] sm:$0xff]  ;;  %v188_v43 = vld [vmem:[%s2453_s26 + $0x80] sm:$0xff]  ;;  %v251_v44 = vld [vmem:[%s2453_s26 + $0x278] sm:$0xff] }
  0x26   : > { %v252_v45 = vld [vmem:[%s2453_s26 + $0x280] sm:$0xff]  ;;  %v189_v46 = vld [vmem:[%s2453_s26 + $0x88] sm:$0xff]  ;;  %v190_v47 = vld [vmem:[%s2453_s26 + $0x90] sm:$0xff] }
  0x27   : > { %v253_v48 = vld [vmem:[%s2453_s26 + $0x288] sm:$0xff]  ;;  %v254_v49 = vld [vmem:[%s2453_s26 + $0x290] sm:$0xff]  ;;  %v191_v50 = vld [vmem:[%s2453_s26 + $0x98] sm:$0xff] }
  0x28   : > { %2038 = vmatmul.mubr.msk.f32.vlgmr.msra.gmra.mrb[0].mxu0 %vm315_vm0, %v173_v14  ;;  %2134 = vmatmul.mubr.msk.f32.vlgmr.msra.gmra.mrb[0].mxu1 %vm315_vm0, %v237_v16  ;;  %v192_v51 = vld [vmem:[%s2453_s26 + $0xa0] sm:$0xff]  ;;  %v255_v52 = vld [vmem:[%s2453_s26 + $0x298] sm:$0xff]  ;;  %v193_v54 = vld [vmem:[%s2453_s26 + $0xa8] sm:$0xff] }
  0x29   : > { %2040 = vmatprep.mubr.msk.f32.mxu0 %vm315_vm0, %v174_v15  ;;  %2136 = vmatprep.mubr.msk.f32.mxu1 %vm315_vm0, %v238_v17  ;;  %v256_v53 = vld [vmem:[%s2453_s26 + $0x2a0] sm:$0xff]  ;;  %v194_v55 = vld [vmem:[%s2453_s26 + $0xb0] sm:$0xff]  ;;  %v257_v56 = vld [vmem:[%s2453_s26 + $0x2a8] sm:$0xff] }
  0x2a   : > { %v258_v57 = vld [vmem:[%s2453_s26 + $0x2b0] sm:$0xff]  ;;  %v195_v58 = vld [vmem:[%s2453_s26 + $0xb8] sm:$0xff]  ;;  %v196_v59 = vld [vmem:[%s2453_s26 + $0xc0] sm:$0xff] }
  0x2b   : > { %v259_v60 = vld [vmem:[%s2453_s26 + $0x2b8] sm:$0xff]  ;;  %v260_v61 = vld [vmem:[%s2453_s26 + $0x2c0] sm:$0xff]  ;;  %v197_v62 = vld [vmem:[%s2453_s26 + $0xc8] sm:$0xff] }
  0x2c   : > { %2041 = vmatmul.mubr.msk.f32.gmra.mrb[2].mxu0 %vm315_vm0, %v175_v18  ;;  %2137 = vmatmul.mubr.msk.f32.gmra.mrb[2].mxu1 %vm315_vm0, %v239_v20  ;;  %v198_v63 = vld [vmem:[%s2453_s26 + $0xd0] sm:$0xff]  ;;  %v261_v0 = vld [vmem:[%s2453_s26 + $0x2c8] sm:$0xff]  ;;  %v199_v2 = vld [vmem:[%s2453_s26 + $0xd8] sm:$0xff] }
  0x2d   : > { %2043 = vmatprep.mubr.msk.f32.mxu0 %vm315_vm0, %v176_v19  ;;  %2139 = vmatprep.mubr.msk.f32.mxu1 %vm315_vm0, %v240_v21  ;;  %v262_v1 = vld [vmem:[%s2453_s26 + $0x2d0] sm:$0xff]  ;;  %v200_v3 = vld [vmem:[%s2453_s26 + $0xe0] sm:$0xff]  ;;  %v263_v4 = vld [vmem:[%s2453_s26 + $0x2d8] sm:$0xff] }
  0x2e   : > { %v264_v5 = vld [vmem:[%s2453_s26 + $0x2e0] sm:$0xff]  ;;  %v201_v6 = vld [vmem:[%s2453_s26 + $0xe8] sm:$0xff]  ;;  %v202_v7 = vld [vmem:[%s2453_s26 + $0xf0] sm:$0xff] }
  0x2f   : > { %v265_v8 = vld [vmem:[%s2453_s26 + $0x2e8] sm:$0xff]  ;;  %v266_v9 = vld [vmem:[%s2453_s26 + $0x2f0] sm:$0xff]  ;;  %v203_v10 = vld [vmem:[%s2453_s26 + $0xf8] sm:$0xff] }
  0x30   : > { %2044 = vmatmul.mubr.msk.f32.gmra.mrb[4].mxu0 %vm315_vm0, %v177_v22  ;;  %2140 = vmatmul.mubr.msk.f32.gmra.mrb[4].mxu1 %vm315_vm0, %v241_v24  ;;  %v204_v11 = vld [vmem:[%s2453_s26 + $0x100] sm:$0xff]  ;;  %v267_v12 = vld [vmem:[%s2453_s26 + $0x2f8] sm:$0xff]  ;;  %v205_v14 = vld [vmem:[%s2453_s26 + $0x108] sm:$0xff] }
  0x31   : > { %2046 = vmatprep.mubr.msk.f32.mxu0 %vm315_vm0, %v178_v23  ;;  %2142 = vmatprep.mubr.msk.f32.mxu1 %vm315_vm0, %v242_v25  ;;  %v268_v13 = vld [vmem:[%s2453_s26 + $0x300] sm:$0xff]  ;;  %v206_v15 = vld [vmem:[%s2453_s26 + $0x110] sm:$0xff]  ;;  %v269_v16 = vld [vmem:[%s2453_s26 + $0x308] sm:$0xff] }
  0x32   : > { %v270_v17 = vld [vmem:[%s2453_s26 + $0x310] sm:$0xff]  ;;  %v207_v18 = vld [vmem:[%s2453_s26 + $0x118] sm:$0xff]  ;;  %v208_v19 = vld [vmem:[%s2453_s26 + $0x120] sm:$0xff] }
  0x33   : > { %v271_v20 = vld [vmem:[%s2453_s26 + $0x318] sm:$0xff]  ;;  %v272_v21 = vld [vmem:[%s2453_s26 + $0x320] sm:$0xff]  ;;  %v209_v22 = vld [vmem:[%s2453_s26 + $0x128] sm:$0xff] }
  0x34   : > { %2047 = vmatmul.mubr.msk.f32.gmra.mrb[6].mxu0 %vm315_vm0, %v179_v26  ;;  %2143 = vmatmul.mubr.msk.f32.gmra.mrb[6].mxu1 %vm315_vm0, %v243_v28  ;;  %v210_v23 = vld [vmem:[%s2453_s26 + $0x130] sm:$0xff]  ;;  %v273_v24 = vld [vmem:[%s2453_s26 + $0x328] sm:$0xff]  ;;  %v211_v26 = vld [vmem:[%s2453_s26 + $0x138] sm:$0xff] }
  0x35   : > { %2049 = vmatprep.mubr.msk.f32.mxu0 %vm315_vm0, %v180_v27  ;;  %2145 = vmatprep.mubr.msk.f32.mxu1 %vm315_vm0, %v244_v29  ;;  %v274_v25 = vld [vmem:[%s2453_s26 + $0x330] sm:$0xff]  ;;  %v212_v27 = vld [vmem:[%s2453_s26 + $0x140] sm:$0xff]  ;;  %v275_v28 = vld [vmem:[%s2453_s26 + $0x338] sm:$0xff] }
  0x36   : > { %v276_v29 = vld [vmem:[%s2453_s26 + $0x340] sm:$0xff] }
  0x38   : > { %2050 = vmatmul.mubr.msk.f32.gmra.mrb[8].mxu0 %vm315_vm0, %v181_v30  ;;  %2146 = vmatmul.mubr.msk.f32.gmra.mrb[8].mxu1 %vm315_vm0, %v245_v32  ;;  %v213_v30 = vld [vmem:[%s2453_s26 + $0x148] sm:$0xff] }
  0x39   : > { %2052 = vmatprep.mubr.msk.f32.mxu0 %vm315_vm0, %v182_v31  ;;  %2148 = vmatprep.mubr.msk.f32.mxu1 %vm315_vm0, %v246_v33  ;;  %v214_v31 = vld [vmem:[%s2453_s26 + $0x150] sm:$0xff]  ;;  %v277_v32 = vld [vmem:[%s2453_s26 + $0x348] sm:$0xff] }
  0x3a   : > { %v278_v33 = vld [vmem:[%s2453_s26 + $0x350] sm:$0xff] }
  0x3c   : > { %2053 = vmatmul.mubr.msk.f32.gmra.mrb[10].mxu0 %vm315_vm0, %v183_v34  ;;  %2149 = vmatmul.mubr.msk.f32.gmra.mrb[10].mxu1 %vm315_vm0, %v247_v36  ;;  %v215_v34 = vld [vmem:[%s2453_s26 + $0x158] sm:$0xff] }
  0x3d   : > { %2055 = vmatprep.mubr.msk.f32.mxu0 %vm315_vm0, %v184_v35  ;;  %2151 = vmatprep.mubr.msk.f32.mxu1 %vm315_vm0, %v248_v37  ;;  %v216_v35 = vld [vmem:[%s2453_s26 + $0x160] sm:$0xff]  ;;  %v279_v36 = vld [vmem:[%s2453_s26 + $0x358] sm:$0xff] }
  0x3e   : > { %v280_v37 = vld [vmem:[%s2453_s26 + $0x360] sm:$0xff] }
  0x40   : > { %2056 = vmatmul.mubr.msk.f32.gmra.mrb[12].mxu0 %vm315_vm0, %v185_v38  ;;  %2152 = vmatmul.mubr.msk.f32.gmra.mrb[12].mxu1 %vm315_vm0, %v249_v40  ;;  %v217_v38 = vld [vmem:[%s2453_s26 + $0x168] sm:$0xff] }
  0x41   : > { %2058 = vmatprep.mubr.msk.f32.mxu0 %vm315_vm0, %v186_v39  ;;  %2154 = vmatprep.mubr.msk.f32.mxu1 %vm315_vm0, %v250_v41  ;;  %v218_v39 = vld [vmem:[%s2453_s26 + $0x170] sm:$0xff]  ;;  %v281_v40 = vld [vmem:[%s2453_s26 + $0x368] sm:$0xff]  ;;  %v219_v41 = vld [vmem:[%s2453_s26 + $0x178] sm:$0xff] }
  0x44   : > { %2059 = vmatmul.mubr.msk.f32.gmra.mrb[14].mxu0 %vm315_vm0, %v187_v42  ;;  %2155 = vmatmul.mubr.msk.f32.gmra.mrb[14].mxu1 %vm315_vm0, %v251_v44  ;;  %v282_v42 = vld [vmem:[%s2453_s26 + $0x370] sm:$0xff]  ;;  %v283_v44 = vld [vmem:[%s2453_s26 + $0x378] sm:$0xff] }
  0x45   : > { %2061 = vmatprep.mubr.msk.f32.mxu0 %vm315_vm0, %v188_v43  ;;  %2157 = vmatprep.mubr.msk.f32.mxu1 %vm315_vm0, %v252_v45  ;;  %v220_v43 = vld [vmem:[%s2453_s26 + $0x180] sm:$0xff]  ;;  %v221_v45 = vld [vmem:[%s2453_s26 + $0x188] sm:$0xff] }
  0x48   : > { %2062 = vmatmul.mubr.msk.f32.gmra.mrb[16].mxu0 %vm315_vm0, %v189_v46  ;;  %2158 = vmatmul.mubr.msk.f32.gmra.mrb[16].mxu1 %vm315_vm0, %v253_v48  ;;  %v284_v46 = vld [vmem:[%s2453_s26 + $0x380] sm:$0xff]  ;;  %v285_v48 = vld [vmem:[%s2453_s26 + $0x388] sm:$0xff] }
  0x49   : > { %2064 = vmatprep.mubr.msk.f32.mxu0 %vm315_vm0, %v190_v47  ;;  %2160 = vmatprep.mubr.msk.f32.mxu1 %vm315_vm0, %v254_v49  ;;  %v222_v47 = vld [vmem:[%s2453_s26 + $0x190] sm:$0xff]  ;;  %v223_v49 = vld [vmem:[%s2453_s26 + $0x198] sm:$0xff] }
  0x4c   : > { %2065 = vmatmul.mubr.msk.f32.gmra.mrb[18].mxu0 %vm315_vm0, %v191_v50  ;;  %2161 = vmatmul.mubr.msk.f32.gmra.mrb[18].mxu1 %vm315_vm0, %v255_v52  ;;  %v224_v50 = vld [vmem:[%s2453_s26 + $0x1a0] sm:$0xff]  ;;  %v286_v52 = vld [vmem:[%s2453_s26 + $0x390] sm:$0xff] }
  0x4d   : > { %2067 = vmatprep.mubr.msk.f32.mxu0 %vm315_vm0, %v192_v51  ;;  %2163 = vmatprep.mubr.msk.f32.mxu1 %vm315_vm0, %v256_v53  ;;  %v225_v51 = vld [vmem:[%s2453_s26 + $0x1a8] sm:$0xff]  ;;  %v226_v53 = vld [vmem:[%s2453_s26 + $0x1b0] sm:$0xff] }
  0x50   : > { %2068 = vmatmul.mubr.msk.f32.gmra.mrb[20].mxu0 %vm315_vm0, %v193_v54  ;;  %2164 = vmatmul.mubr.msk.f32.gmra.mrb[20].mxu1 %vm315_vm0, %v257_v56  ;;  %v287_v54 = vld [vmem:[%s2453_s26 + $0x398] sm:$0xff]  ;;  %v228_v56 = vld [vmem:[%s2453_s26 + $0x1c0] sm:$0xff] }
  0x51   : > { %2070 = vmatprep.mubr.msk.f32.mxu0 %vm315_vm0, %v194_v55  ;;  %2166 = vmatprep.mubr.msk.f32.mxu1 %vm315_vm0, %v258_v57  ;;  %v227_v55 = vld [vmem:[%s2453_s26 + $0x1b8] sm:$0xff]  ;;  %v229_v57 = vld [vmem:[%s2453_s26 + $0x1c8] sm:$0xff] }
  0x54   : > { %2071 = vmatmul.mubr.msk.f32.gmra.mrb[22].mxu0 %vm315_vm0, %v195_v58  ;;  %2167 = vmatmul.mubr.msk.f32.gmra.mrb[22].mxu1 %vm315_vm0, %v259_v60  ;;  %v288_v58 = vld [vmem:[%s2453_s26 + $0x3a0] sm:$0xff]  ;;  %v289_v60 = vld [vmem:[%s2453_s26 + $0x3a8] sm:$0xff] }
  0x55   : > { %2073 = vmatprep.mubr.msk.f32.mxu0 %vm315_vm0, %v196_v59  ;;  %2169 = vmatprep.mubr.msk.f32.mxu1 %vm315_vm0, %v260_v61  ;;  %v230_v59 = vld [vmem:[%s2453_s26 + $0x1d0] sm:$0xff]  ;;  %v231_v61 = vld [vmem:[%s2453_s26 + $0x1d8] sm:$0xff] }
  0x58   : > { %2074 = vmatmul.mubr.msk.f32.gmra.mrb[24].mxu0 %vm315_vm0, %v197_v62  ;;  %2170 = vmatmul.mubr.msk.f32.gmra.mrb[24].mxu1 %vm315_vm0, %v261_v0  ;;  %v232_v62 = vld [vmem:[%s2453_s26 + $0x1e0] sm:$0xff]  ;;  %v291_v0 = vld [vmem:[%s2453_s26 + $0x3b8] sm:$0xff] }
  0x59   : > { %2076 = vmatprep.mubr.msk.f32.mxu0 %vm315_vm0, %v198_v63  ;;  %2172 = vmatprep.mubr.msk.f32.mxu1 %vm315_vm0, %v262_v1  ;;  %v290_v63 = vld [vmem:[%s2453_s26 + $0x3b0] sm:$0xff]  ;;  %v233_v1 = vld [vmem:[%s2453_s26 + $0x1e8] sm:$0xff] }
  0x5c   : > { %2077 = vmatmul.mubr.msk.f32.gmra.mrb[26].mxu0 %vm315_vm0, %v199_v2  ;;  %2173 = vmatmul.mubr.msk.f32.gmra.mrb[26].mxu1 %vm315_vm0, %v263_v4  ;;  %v234_v2 = vld [vmem:[%s2453_s26 + $0x1f0] sm:$0xff]  ;;  %v292_v4 = vld [vmem:[%s2453_s26 + $0x3c0] sm:$0xff] }
  0x5d   : > { %2079 = vmatprep.mubr.msk.f32.mxu0 %vm315_vm0, %v200_v3  ;;  %2175 = vmatprep.mubr.msk.f32.mxu1 %vm315_vm0, %v264_v5  ;;  %v235_v3 = vld [vmem:[%s2453_s26 + $0x1f8] sm:$0xff]  ;;  %v293_v5 = vld [vmem:[%s2453_s26 + $0x3c8] sm:$0xff] }
  0x60   : > { %2080 = vmatmul.mubr.msk.f32.gmra.mrb[28].mxu0 %vm315_vm0, %v201_v6  ;;  %2176 = vmatmul.mubr.msk.f32.gmra.mrb[28].mxu1 %vm315_vm0, %v265_v8  ;;  %v294_v6 = vld [vmem:[%s2453_s26 + $0x3d0] sm:$0xff]  ;;  %v296_v8 = vld [vmem:[%s2453_s26 + $0x3e0] sm:$0xff] }
  0x61   : > { %2082 = vmatprep.mubr.msk.f32.mxu0 %vm315_vm0, %v202_v7  ;;  %2178 = vmatprep.mubr.msk.f32.mxu1 %vm315_vm0, %v266_v9  ;;  %v295_v7 = vld [vmem:[%s2453_s26 + $0x3d8] sm:$0xff]  ;;  %v297_v9 = vld [vmem:[%s2453_s26 + $0x3e8] sm:$0xff] }
  0x64   : > { %2083 = vmatmul.mubr.msk.f32.gmra.mrb[30].mxu0 %vm315_vm0, %v203_v10  ;;  %2179 = vmatmul.mubr.msk.f32.gmra.mrb[30].mxu1 %vm315_vm0, %v267_v12  ;;  %v298_v10 = vld [vmem:[%s2453_s26 + $0x3f0] sm:$0xff]  ;;  %v2714_v12 = vld [vmem:[%s3202_s2] ss:$0 sm:$0xff] }
  0x65   : > { %2085 = vmatprep.mubr.msk.f32.mxu0 %vm315_vm0, %v204_v11  ;;  %2181 = vmatprep.mubr.msk.f32.mxu1 %vm315_vm0, %v268_v13  ;;  %v299_v11 = vld [vmem:[%s2453_s26 + $0x3f8] sm:$0xff] }
  0x68   : > { %2086 = vmatmul.mubr.msk.f32.gmra.mrb[32].mxu0 %vm315_vm0, %v205_v14  ;;  %2182 = vmatmul.mubr.msk.f32.gmra.mrb[32].mxu1 %vm315_vm0, %v269_v16 }
  0x69   : > { %2088 = vmatprep.mubr.msk.f32.mxu0 %vm315_vm0, %v206_v15  ;;  %2184 = vmatprep.mubr.msk.f32.mxu1 %vm315_vm0, %v270_v17 }
  0x6c   : > { %2089 = vmatmul.mubr.msk.f32.gmra.mrb[34].mxu0 %vm315_vm0, %v207_v18  ;;  %2185 = vmatmul.mubr.msk.f32.gmra.mrb[34].mxu1 %vm315_vm0, %v271_v20 }
  0x6d   : > { %2091 = vmatprep.mubr.msk.f32.mxu0 %vm315_vm0, %v208_v19  ;;  %2187 = vmatprep.mubr.msk.f32.mxu1 %vm315_vm0, %v272_v21 }
  0x70   : > { %2092 = vmatmul.mubr.msk.f32.gmra.mrb[36].mxu0 %vm315_vm0, %v209_v22  ;;  %2188 = vmatmul.mubr.msk.f32.gmra.mrb[36].mxu1 %vm315_vm0, %v273_v24 }
  0x71   : > { %2094 = vmatprep.mubr.msk.f32.mxu0 %vm315_vm0, %v210_v23  ;;  %2190 = vmatprep.mubr.msk.f32.mxu1 %vm315_vm0, %v274_v25 }
  0x74   : > { %2095 = vmatmul.mubr.msk.f32.gmra.mrb[38].mxu0 %vm315_vm0, %v211_v26  ;;  %2191 = vmatmul.mubr.msk.f32.gmra.mrb[38].mxu1 %vm315_vm0, %v275_v28 }
  0x75   : > { %2097 = vmatprep.mubr.msk.f32.mxu0 %vm315_vm0, %v212_v27  ;;  %2193 = vmatprep.mubr.msk.f32.mxu1 %vm315_vm0, %v276_v29 }
  0x78   : > { %2098 = vmatmul.mubr.msk.f32.gmra.mrb[40].mxu0 %vm315_vm0, %v213_v30  ;;  %2194 = vmatmul.mubr.msk.f32.gmra.mrb[40].mxu1 %vm315_vm0, %v277_v32 }
  0x79   : > { %2100 = vmatprep.mubr.msk.f32.mxu0 %vm315_vm0, %v214_v31  ;;  %2196 = vmatprep.mubr.msk.f32.mxu1 %vm315_vm0, %v278_v33 }
  0x7c   : > { %2101 = vmatmul.mubr.msk.f32.gmra.mrb[42].mxu0 %vm315_vm0, %v215_v34  ;;  %2197 = vmatmul.mubr.msk.f32.gmra.mrb[42].mxu1 %vm315_vm0, %v279_v36 }
  0x7d   : > { %2103 = vmatprep.mubr.msk.f32.mxu0 %vm315_vm0, %v216_v35  ;;  %2199 = vmatprep.mubr.msk.f32.mxu1 %vm315_vm0, %v280_v37 }
  0x80   : > { %2104 = vmatmul.mubr.msk.f32.gmra.mrb[44].mxu0 %vm315_vm0, %v217_v38  ;;  %2200 = vmatmul.mubr.msk.f32.gmra.mrb[44].mxu1 %vm315_vm0, %v281_v40 }
  0x81   : > { %2106 = vmatprep.mubr.msk.f32.mxu0 %vm315_vm0, %v218_v39  ;;  %2202 = vmatprep.mubr.msk.f32.mxu1 %vm315_vm0, %v282_v42 }
  0x84   : > { %2107 = vmatmul.mubr.msk.f32.gmra.mrb[46].mxu0 %vm315_vm0, %v219_v41  ;;  %2203 = vmatmul.mubr.msk.f32.gmra.mrb[46].mxu1 %vm315_vm0, %v283_v44 }
  0x85   : > { %2109 = vmatprep.mubr.msk.f32.mxu0 %vm315_vm0, %v220_v43  ;;  %2205 = vmatprep.mubr.msk.f32.mxu1 %vm315_vm0, %v284_v46 }
  0x88   : > { %2110 = vmatmul.mubr.msk.f32.gmra.mrb[48].mxu0 %vm315_vm0, %v221_v45  ;;  %2206 = vmatmul.mubr.msk.f32.gmra.mrb[48].mxu1 %vm315_vm0, %v285_v48 }
  0x89   : > { %2112 = vmatprep.mubr.msk.f32.mxu0 %vm315_vm0, %v222_v47  ;;  %2208 = vmatprep.mubr.msk.f32.mxu1 %vm315_vm0, %v286_v52 }
  0x8c   : > { %2113 = vmatmul.mubr.msk.f32.gmra.mrb[50].mxu0 %vm315_vm0, %v223_v49  ;;  %2209 = vmatmul.mubr.msk.f32.gmra.mrb[50].mxu1 %vm315_vm0, %v287_v54 }
  0x8d   : > { %2115 = vmatprep.mubr.msk.f32.mxu0 %vm315_vm0, %v224_v50  ;;  %2211 = vmatprep.mubr.msk.f32.mxu1 %vm315_vm0, %v288_v58 }
  0x90   : > { %2116 = vmatmul.mubr.msk.f32.gmra.mrb[52].mxu0 %vm315_vm0, %v225_v51  ;;  %2212 = vmatmul.mubr.msk.f32.gmra.mrb[52].mxu1 %vm315_vm0, %v289_v60 }
  0x91   : > { %2118 = vmatprep.mubr.msk.f32.mxu0 %vm315_vm0, %v226_v53  ;;  %2214 = vmatprep.mubr.msk.f32.mxu1 %vm315_vm0, %v290_v63 }
  0x94   : > { %2119 = vmatmul.mubr.msk.f32.gmra.mrb[54].mxu0 %vm315_vm0, %v227_v55  ;;  %2215 = vmatmul.mubr.msk.f32.gmra.mrb[54].mxu1 %vm315_vm0, %v291_v0 }
  0x95   : > { %2121 = vmatprep.mubr.msk.f32.mxu0 %vm315_vm0, %v228_v56  ;;  %2217 = vmatprep.mubr.msk.f32.mxu1 %vm315_vm0, %v292_v4 }
  0x98   : > { %2122 = vmatmul.mubr.msk.f32.gmra.mrb[56].mxu0 %vm315_vm0, %v229_v57  ;;  %2218 = vmatmul.mubr.msk.f32.gmra.mrb[56].mxu1 %vm315_vm0, %v293_v5 }
  0x99   : > { %2124 = vmatprep.mubr.msk.f32.mxu0 %vm315_vm0, %v230_v59  ;;  %2220 = vmatprep.mubr.msk.f32.mxu1 %vm315_vm0, %v294_v6 }
  0x9c   : > { %2125 = vmatmul.mubr.msk.f32.gmra.mrb[58].mxu0 %vm315_vm0, %v231_v61  ;;  %2221 = vmatmul.mubr.msk.f32.gmra.mrb[58].mxu1 %vm315_vm0, %v295_v7 }
  0x9d   : > { %2127 = vmatprep.mubr.msk.f32.mxu0 %vm315_vm0, %v232_v62  ;;  %2223 = vmatprep.mubr.msk.f32.mxu1 %vm315_vm0, %v296_v8 }
  0xa0   : > { %2128 = vmatmul.mubr.msk.f32.gmra.mrb[60].mxu0 %vm315_vm0, %v233_v1  ;;  %2224 = vmatmul.mubr.msk.f32.gmra.mrb[60].mxu1 %vm315_vm0, %v297_v9 }
  0xa1   : > { %2130 = vmatprep.mubr.msk.f32.mxu0 %vm315_vm0, %v234_v2  ;;  %2226 = vmatprep.mubr.msk.f32.mxu1 %vm315_vm0, %v298_v10 }
  0xa4   : > { %2131 = vmatmul.mubr.msk.f32.gmra.mrb[62].mxu0 %vm315_vm0, %v235_v3  ;;  %2227 = vmatmul.mubr.msk.f32.gmra.mrb[62].mxu1 %vm315_vm0, %v299_v11 }
  0xfb   : > { %v2039_v13 = vpop.f32.mrb[0].mxu0  ;;  %v2716_v15 = vpop.f32.mrb[0].mxu1 }
  0xfc   : > { %v766_v14 = vpop.f32.mrb[1].mxu0  ;;  %v2719_v17 = vpop.f32.mrb[1].mxu1  ;;  %v772_v21 = vadd.f32 %v2039_v13, %v2714_v12 }
  0xfd   : > { %v767_v16 = vadd.f32 %v2714_v12, %v766_v14 }
  0xff   : > { %v2042_v18 = vpop.f32.mrb[2].mxu0  ;;  %1405 = vxpose.xlu0.b32.start [1/16] (narrow) %v767_v16, 8  ;;  %v2721_v20 = vpop.f32.mrb[2].mxu1 }
 0x100   : > { %v776_v19 = vpop.f32.mrb[3].mxu0  ;;  %v2724_v22 = vpop.f32.mrb[3].mxu1  ;;  %v782_v31 = vadd.f32 %v2042_v18, %v2714_v12 }
 0x101   : > { %v777_v26 = vadd.f32 %v2714_v12, %v776_v19 }
 0x103   : > { %v2045_v23 = vpop.f32.mrb[4].mxu0  ;;  %1406 = vxpose.xlu0.b32.cont [2/16] (narrow) %v772_v21, 8  ;;  %v2726_v25 = vpop.f32.mrb[4].mxu1 }
 0x104   : > { %v786_v24 = vpop.f32.mrb[5].mxu0  ;;  %v2729_v27 = vpop.f32.mrb[5].mxu1  ;;  %v792_v41 = vadd.f32 %v2045_v23, %v2714_v12 }
 0x105   : > { %v787_v36 = vadd.f32 %v2714_v12, %v786_v24 }
 0x107   : > { %v2048_v28 = vpop.f32.mrb[6].mxu0  ;;  %1407 = vxpose.xlu0.b32.cont [3/16] (narrow) %v777_v26, 8  ;;  %v2731_v30 = vpop.f32.mrb[6].mxu1 }
 0x108   : > { %v796_v29 = vpop.f32.mrb[7].mxu0  ;;  %v2734_v32 = vpop.f32.mrb[7].mxu1  ;;  %v802_v51 = vadd.f32 %v2048_v28, %v2714_v12 }
 0x109   : > { %v797_v46 = vadd.f32 %v2714_v12, %v796_v29 }
 0x10b   : > { %v2051_v33 = vpop.f32.mrb[8].mxu0  ;;  %1408 = vxpose.xlu0.b32.cont [4/16] (narrow) %v782_v31, 8  ;;  %v2736_v35 = vpop.f32.mrb[8].mxu1 }
 0x10c   : > { %v806_v34 = vpop.f32.mrb[9].mxu0  ;;  %v2739_v37 = vpop.f32.mrb[9].mxu1  ;;  %v812_v62 = vadd.f32 %v2051_v33, %v2714_v12 }
 0x10d   : > { %v807_v56 = vadd.f32 %v2714_v12, %v806_v34 }
 0x10f   : > { %v2054_v38 = vpop.f32.mrb[10].mxu0  ;;  %1409 = vxpose.xlu0.b32.cont [5/16] (narrow) %v787_v36, 8  ;;  %v2741_v40 = vpop.f32.mrb[10].mxu1 }
 0x110   : > { %v816_v39 = vpop.f32.mrb[11].mxu0  ;;  %v2744_v42 = vpop.f32.mrb[11].mxu1  ;;  %v822_v10 = vadd.f32 %v2054_v38, %v2714_v12 }
 0x111   : > { %v817_v5 = vadd.f32 %v2714_v12, %v816_v39 }
 0x113   : > { %v2057_v43 = vpop.f32.mrb[12].mxu0  ;;  %1410 = vxpose.xlu0.b32.cont [6/16] (narrow) %v792_v41, 8  ;;  %v2746_v45 = vpop.f32.mrb[12].mxu1 }
 0x114   : > { %v826_v44 = vpop.f32.mrb[13].mxu0  ;;  %v2749_v47 = vpop.f32.mrb[13].mxu1  ;;  %v832_v29 = vadd.f32 %v2057_v43, %v2714_v12 }
 0x115   : > { %v827_v21 = vadd.f32 %v2714_v12, %v826_v44 }
 0x117   : > { %v2751_v48 = vpop.f32.mrb[14].mxu0  ;;  %1411 = vxpose.xlu0.b32.cont [7/16] (narrow) %v797_v46, 8  ;;  %v2753_v50 = vpop.f32.mrb[14].mxu1 }
 0x118   : > { %v836_v49 = vpop.f32.mrb[15].mxu0  ;;  %v2756_v52 = vpop.f32.mrb[15].mxu1 }
 0x119   : > { %v837_v41 = vadd.f32 %v2714_v12, %v836_v49  ;;  %v1087_v49 = vadd.f32 %v2714_v12, %v2719_v17 }
 0x11b   : > { %v2063_v53 = vpop.f32.mrb[16].mxu0  ;;  %1412 = vxpose.xlu0.b32.cont [8/16] (narrow) %v802_v51, 8  ;;  %v2758_v55 = vpop.f32.mrb[16].mxu1 }
 0x11c   : > { %v846_v54 = vpop.f32.mrb[17].mxu0  ;;  %v2762_v58 = vpop.f32.mrb[17].mxu1  ;;  %v852_v63 = vadd.f32 %v2063_v53, %v2714_v12  ;;  %v842_v53 = vadd.f32 %v2751_v48, %v2714_v12 }
 0x11d   : > { %v847_v57 = vadd.f32 %v2714_v12, %v846_v54 }
 0x11f   : > { %1437 = vxpose.xlu1.b32.start [1/16] (narrow) %v847_v57, 8  ;;  %1413 = vxpose.xlu0.b32.cont [9/16] (narrow) %v807_v56, 8  ;;  %v2066_v59 = vpop.f32.mrb[18].mxu0  ;;  %v2764_v61 = vpop.f32.mrb[18].mxu1 }
 0x120   : > { %v856_v60 = vpop.f32.mrb[19].mxu0  ;;  %v2768_v0 = vpop.f32.mrb[19].mxu1  ;;  %v862_v11 = vadd.f32 %v2066_v59, %v2714_v12 }
 0x121   : > { %v857_v1 = vadd.f32 %v2714_v12, %v856_v60 }
 0x123   : > { %1438 = vxpose.xlu1.b32.cont [2/16] (narrow) %v852_v63, 8  ;;  %1414 = vxpose.xlu0.b32.cont [10/16] (narrow) %v812_v62, 8  ;;  %v2069_v2 = vpop.f32.mrb[20].mxu0  ;;  %v2771_v4 = vpop.f32.mrb[20].mxu1 }
 0x124   : > { %v866_v3 = vpop.f32.mrb[21].mxu0  ;;  %v2774_v6 = vpop.f32.mrb[21].mxu1  ;;  %v872_v31 = vadd.f32 %v2069_v2, %v2714_v12 }
 0x125   : > { %v867_v14 = vadd.f32 %v2714_v12, %v866_v3  ;;  %v1092_v3 = vadd.f32 %v2716_v15, %v2714_v12 }
 0x127   : > { %1439 = vxpose.xlu1.b32.cont [3/16] (narrow) %v857_v1, 8  ;;  %1415 = vxpose.xlu0.b32.cont [11/16] (narrow) %v817_v5, 8  ;;  %v2072_v7 = vpop.f32.mrb[22].mxu0  ;;  %v2776_v9 = vpop.f32.mrb[22].mxu1 }
 0x128   : > { %v876_v8 = vpop.f32.mrb[23].mxu0  ;;  %v2780_v13 = vpop.f32.mrb[23].mxu1  ;;  %v882_v54 = vadd.f32 %v2072_v7, %v2714_v12 }
 0x129   : > { %v877_v34 = vadd.f32 %v2714_v12, %v876_v8 }
 0x12b   : > { %1440 = vxpose.xlu1.b32.cont [4/16] (narrow) %v862_v11, 8  ;;  %1416 = vxpose.xlu0.b32.cont [12/16] (narrow) %v822_v10, 8  ;;  %v2075_v16 = vpop.f32.mrb[24].mxu0  ;;  %v2783_v19 = vpop.f32.mrb[24].mxu1 }
 0x12c   : > { %v886_v18 = vpop.f32.mrb[25].mxu0  ;;  %v2786_v23 = vpop.f32.mrb[25].mxu1  ;;  %v892_v17 = vadd.f32 %v2075_v16, %v2714_v12 }
 0x12d   : > { %v887_v57 = vadd.f32 %v2714_v12, %v886_v18 }
 0x12f   : > { %1441 = vxpose.xlu1.b32.cont [5/16] (narrow) %v867_v14, 8  ;;  %1417 = vxpose.xlu0.b32.cont [13/16] (narrow) %v827_v21, 8  ;;  %v2078_v24 = vpop.f32.mrb[26].mxu0  ;;  %v2788_v28 = vpop.f32.mrb[26].mxu1  ;;  %v1097_v14 = vadd.f32 %v2714_v12, %v2724_v22 }
 0x130   : > { %v896_v26 = vpop.f32.mrb[27].mxu0  ;;  %v2792_v33 = vpop.f32.mrb[27].mxu1 }
 0x131   : > { %v897_v7 = vadd.f32 %v2714_v12, %v896_v26  ;;  %v1102_v26 = vadd.f32 %v2721_v20, %v2714_v12 }
 0x133   : > { %1442 = vxpose.xlu1.b32.cont [6/16] (narrow) %v872_v31, 8  ;;  %1418 = vxpose.xlu0.b32.cont [14/16] (narrow) %v832_v29, 8  ;;  %v2081_v36 = vpop.f32.mrb[28].mxu0  ;;  %v2795_v39 = vpop.f32.mrb[28].mxu1  ;;  %v902_v29 = vadd.f32 %v2078_v24, %v2714_v12 }
 0x134   : > { %v906_v38 = vpop.f32.mrb[29].mxu0  ;;  %v2798_v44 = vpop.f32.mrb[29].mxu1 }
 0x137   : > { %1443 = vxpose.xlu1.b32.cont [7/16] (narrow) %v877_v34, 8  ;;  %1419 = vxpose.xlu0.b32.cont [15/16] (narrow) %v837_v41, 8  ;;  %v2800_v46 = vpop.f32.mrb[30].mxu0  ;;  %v2802_v51 = vpop.f32.mrb[30].mxu1  ;;  %v907_v34 = vadd.f32 %v2714_v12, %v906_v38 }
 0x138   : > { %v916_v43 = vpop.f32.mrb[31].mxu0  ;;  %v2807_v56 = vpop.f32.mrb[31].mxu1 }
 0x13b   : > { %1444 = vxpose.xlu1.b32.cont [8/16] (narrow) %v882_v54, 8  ;;  %1420 = vxpose.xlu0.b32.end [16/16] (narrow) %v842_v53, 8  ;;  %v2812_v59 = vpop.f32.mrb[32].mxu0  ;;  %v2816_v62 = vpop.f32.mrb[32].mxu1  ;;  %v1107_v54 = vadd.f32 %v2714_v12, %v2729_v27 }
 0x13c   : > { %v2814_v60 = vpop.f32.mrb[33].mxu0  ;;  %v2818_v63 = vpop.f32.mrb[33].mxu1 }
 0x13f   : > { %1445 = vxpose.xlu1.b32.cont [9/16] (narrow) %v887_v57, 8  ;;  %1533 = vxpose.xlu0.b32.start [1/16] (narrow) %v1087_v49, 8  ;;  %v2820_v48 = vpop.f32.mrb[34].mxu0  ;;  %v2824_v2 = vpop.f32.mrb[34].mxu1  ;;  %v1112_v49 = vadd.f32 %v2726_v25, %v2714_v12 }
 0x140   : > { %v2822_v1 = vpop.f32.mrb[35].mxu0  ;;  %v2829_v5 = vpop.f32.mrb[35].mxu1 }
 0x143   : > { %1446 = vxpose.xlu1.b32.cont [10/16] (narrow) %v892_v17, 8  ;;  %1534 = vxpose.xlu0.b32.cont [2/16] (narrow) %v1092_v3, 8  ;;  %v2832_v8 = vpop.f32.mrb[36].mxu0  ;;  %v2836_v11 = vpop.f32.mrb[36].mxu1  ;;  %v912_v17 = vadd.f32 %v2081_v36, %v2714_v12 }
 0x144   : > { %v2834_v10 = vpop.f32.mrb[37].mxu0  ;;  %v2840_v18 = vpop.f32.mrb[37].mxu1 }
 0x147   : > { %1447 = vxpose.xlu1.b32.cont [11/16] (narrow) %v897_v7, 8  ;;  %1535 = vxpose.xlu0.b32.cont [3/16] (narrow) %v1097_v14, 8  ;;  %v2842_v15 = vpop.f32.mrb[38].mxu0  ;;  %v2846_v21 = vpop.f32.mrb[38].mxu1  ;;  %v917_v7 = vadd.f32 %v2714_v12, %v916_v43 }
 0x148   : > { %v2844_v16 = vpop.f32.mrb[39].mxu0  ;;  %v2851_v31 = vpop.f32.mrb[39].mxu1 }
 0x14b   : > { %1448 = vxpose.xlu1.b32.cont [12/16] (narrow) %v902_v29, 8  ;;  %1536 = vxpose.xlu0.b32.cont [4/16] (narrow) %v1102_v26, 8  ;;  %v2854_v22 = vpop.f32.mrb[40].mxu0  ;;  %v2858_v53 = vpop.f32.mrb[40].mxu1  ;;  %v1117_v29 = vadd.f32 %v2714_v12, %v2734_v32  ;;  %v1167_v32 = vadd.f32 %v2714_v12, %v2762_v58  ;;  %v1132_v58 = vadd.f32 %v2736_v35, %v2714_v12 }
 0x14c   : > { %v2856_v41 = vpop.f32.mrb[41].mxu0  ;;  %v2862_v57 = vpop.f32.mrb[41].mxu1 }
 0x14f   : > { %1449 = vxpose.xlu1.b32.cont [13/16] (narrow) %v907_v34, 8  ;;  %1537 = vxpose.xlu0.b32.cont [5/16] (narrow) %v1107_v54, 8  ;;  %v2864_v20 = vpop.f32.mrb[42].mxu0  ;;  %v2868_v38 = vpop.f32.mrb[42].mxu1  ;;  %v1122_v54 = vadd.f32 %v2731_v30, %v2714_v12 }
 0x150   : > { %v2866_v24 = vpop.f32.mrb[43].mxu0  ;;  %3206 = vst [vmem:[#allocation5_spill] sm:$0xff] %v2868_v38  ;;  %v2873_v3 = vpop.f32.mrb[43].mxu1  ;;  %v1137_v38 = vadd.f32 %v2714_v12, %v2744_v42 }
 0x151   : > { %3207 = vst [vmem:[#allocation6_spill] sm:$0xff] %v2873_v3  ;;  %v1147_v3 = vadd.f32 %v2714_v12, %v2749_v47 }
 0x153   : > { %1450 = vxpose.xlu1.b32.cont [14/16] (narrow) %v912_v17, 8  ;;  %1538 = vxpose.xlu0.b32.cont [6/16] (narrow) %v1112_v49, 8  ;;  %v2876_v27 = vpop.f32.mrb[44].mxu0  ;;  %v2880_v26 = vpop.f32.mrb[44].mxu1  ;;  %v922_v49 = vadd.f32 %v2800_v46, %v2714_v12 }
 0x154   : > { %v2878_v14 = vpop.f32.mrb[45].mxu0  ;;  %3208 = vst [vmem:[#allocation7_spill] sm:$0xff] %v2880_v26  ;;  %v2884_v34 = vpop.f32.mrb[45].mxu1 }
 0x155   : > { %3209 = vst [vmem:[#allocation8_spill] sm:$0xff] %v2884_v34  ;;  %v1177_v34 = vadd.f32 %v2714_v12, %v2768_v0  ;;  %v1142_v0 = vadd.f32 %v2741_v40, %v2714_v12 }
 0x157   : > { %1451 = vxpose.xlu1.b32.cont [15/16] (narrow) %v917_v7, 8  ;;  %1539 = vxpose.xlu0.b32.cont [7/16] (narrow) %v1117_v29, 8  ;;  %v2886_v25 = vpop.f32.mrb[46].mxu0  ;;  %v2890_v43 = vpop.f32.mrb[46].mxu1 }
 0x158   : > { %v2888_v36 = vpop.f32.mrb[47].mxu0  ;;  %3210 = vst [vmem:[#allocation9_spill] sm:$0xff] %v2890_v43  ;;  %v2896_v17 = vpop.f32.mrb[47].mxu1  ;;  %v1127_v43 = vadd.f32 %v2714_v12, %v2739_v37 }
 0x159   : > { %3211 = vst [vmem:[#allocation10_spill] sm:$0xff] %v2896_v17 }
 0x15b   : > { %1452 = vxpose.xlu1.b32.end [16/16] (narrow) %v922_v49, 8  ;;  %1540 = vxpose.xlu0.b32.cont [8/16] (narrow) %v1122_v54, 8  ;;  %v2900_v7 = vpop.f32.mrb[48].mxu0  ;;  %v2904_v26 = vpop.f32.mrb[48].mxu1  ;;  %v1172_v54 = vadd.f32 %v2758_v55, %v2714_v12 }
 0x15c   : > { %v2902_v29 = vpop.f32.mrb[49].mxu0  ;;  %v2908_v30 = vpop.f32.mrb[49].mxu1 }
 0x15f   : > { %1565 = vxpose.xlu1.b32.start [1/16] (narrow) %v1167_v32, 8  ;;  %1541 = vxpose.xlu0.b32.cont [9/16] (narrow) %v1127_v43, 8  ;;  %v2910_v46 = vpop.f32.mrb[50].mxu0  ;;  %v2918_v49 = vpop.f32.mrb[50].mxu1 }
 0x160   : > { %v2912_v17 = vpop.f32.mrb[51].mxu0  ;;  %3212 = vst [vmem:[#allocation11_spill] sm:$0xff] %v2918_v49  ;;  %v2924_v43 = vpop.f32.mrb[51].mxu1  ;;  %v1187_v49 = vadd.f32 %v2714_v12, %v2774_v6  ;;  %v1152_v6 = vadd.f32 %v2746_v45, %v2714_v12 }
 0x163   : > { %1566 = vxpose.xlu1.b32.cont [2/16] (narrow) %v1172_v54, 8  ;;  %1542 = vxpose.xlu0.b32.cont [10/16] (narrow) %v1132_v58, 8  ;;  %v2922_v37 = vpop.f32.mrb[52].mxu0  ;;  %v1182_v58 = vadd.f32 %v2764_v61, %v2714_v12  ;;  %v2938_v54 = vpop.f32.mrb[52].mxu1 }
 0x164   : > { %v2926_v32 = vpop.f32.mrb[53].mxu0  ;;  %3213 = vst [vmem:[#allocation12_spill] sm:$0xff] %v2938_v54 }
 0x167   : > { %1567 = vxpose.xlu1.b32.cont [3/16] (narrow) %v1177_v34, 8  ;;  %1543 = vxpose.xlu0.b32.cont [11/16] (narrow) %v1137_v38, 8  ;;  %v2930_v35 = vpop.f32.mrb[54].mxu0  ;;  %v2944_v38 = vpop.f32.mrb[53].mxu1 }
 0x168   : > { %v2932_v55 = vpop.f32.mrb[55].mxu0  ;;  %3214 = vst [vmem:[#allocation13_spill] sm:$0xff] %v2944_v38  ;;  %v1197_v38 = vadd.f32 %v2714_v12, %v2780_v13  ;;  %v1162_v13 = vadd.f32 %v2753_v50, %v2714_v12  ;;  %v932_v50 = vadd.f32 %v2812_v59, %v2714_v12  ;;  %v942_v59 = vadd.f32 %v2820_v48, %v2714_v12 }
 0x169   : > { %v952_v48 = vadd.f32 %v2832_v8, %v2714_v12  ;;  %v1242_v8 = vadd.f32 %v2802_v51, %v2714_v12 }
 0x16b   : > { %1568 = vxpose.xlu1.b32.cont [4/16] (narrow) %v1182_v58, 8  ;;  %1544 = vxpose.xlu0.b32.cont [12/16] (narrow) %v1142_v0, 8  ;;  %v2942_v42 = vpop.f32.mrb[56].mxu0  ;;  %v1192_v0 = vadd.f32 %v2771_v4, %v2714_v12  ;;  %v2958_v58 = vpop.f32.mrb[54].mxu1 }
 0x16c   : > { %v2946_v34 = vpop.f32.mrb[57].mxu0  ;;  %3215 = vst [vmem:[#allocation14_spill] sm:$0xff] %v2958_v58  ;;  %v2960_v54 = vpop.f32.mrb[55].mxu1 }
 0x16d   : > { %3216 = vst [vmem:[#allocation15_spill] sm:$0xff] %v2960_v54  ;;  %v2974_v58 = vpop.f32.mrb[56].mxu1  ;;  %v927_v54 = vadd.f32 %v2714_v12, %v2814_v60  ;;  %v1217_v60 = vadd.f32 %v2714_v12, %v2792_v33  ;;  %v1227_v33 = vadd.f32 %v2714_v12, %v2798_v44  ;;  %v1237_v44 = vadd.f32 %v2714_v12, %v2807_v56 }
 0x16f   : > { %1569 = vxpose.xlu1.b32.cont [5/16] (narrow) %v1187_v49, 8  ;;  %1545 = vxpose.xlu0.b32.cont [13/16] (narrow) %v1147_v3, 8  ;;  %v2950_v40 = vpop.f32.mrb[58].mxu0  ;;  %v1157_v49 = vadd.f32 %v2714_v12, %v2756_v52  ;;  %v1207_v52 = vadd.f32 %v2714_v12, %v2786_v23  ;;  %v937_v23 = vadd.f32 %v2714_v12, %v2822_v1 }
 0x170   : > { %v2952_v61 = vpop.f32.mrb[59].mxu0  ;;  %v947_v1 = vadd.f32 %v2714_v12, %v2834_v10  ;;  %v957_v10 = vadd.f32 %v2714_v12, %v2844_v16  ;;  %v967_v16 = vadd.f32 %v2714_v12, %v2856_v41  ;;  %v977_v41 = vadd.f32 %v2714_v12, %v2866_v24 }
 0x171   : > { %v992_v24 = vadd.f32 %v2876_v27, %v2714_v12  ;;  %v1042_v27 = vadd.f32 %v2930_v35, %v2714_v12  ;;  %v1057_v35 = vadd.f32 %v2714_v12, %v2952_v61 }
 0x173   : > { %1570 = vxpose.xlu1.b32.cont [6/16] (narrow) %v1192_v0, 8  ;;  %1546 = vxpose.xlu0.b32.cont [14/16] (narrow) %v1152_v6, 8  ;;  %v2964_v47 = vpop.f32.mrb[60].mxu0  ;;  %v1202_v6 = vadd.f32 %v2776_v9, %v2714_v12  ;;  %v2980_v0 = vpop.f32.mrb[57].mxu1  ;;  %v1212_v9 = vadd.f32 %v2783_v19, %v2714_v12  ;;  %v1222_v19 = vadd.f32 %v2788_v28, %v2714_v12 }
 0x174   : > { %v2966_v3 = vpop.f32.mrb[61].mxu0  ;;  %v1232_v28 = vadd.f32 %v2795_v39, %v2714_v12  ;;  %v1007_v39 = vadd.f32 %v2714_v12, %v2902_v29  ;;  %v1012_v29 = vadd.f32 %v2900_v7, %v2714_v12  ;;  %v1032_v7 = vadd.f32 %v2922_v37, %v2714_v12 }
 0x175   : > { %v1047_v37 = vadd.f32 %v2714_v12, %v2946_v34  ;;  %v1262_v34 = vadd.f32 %v2824_v2, %v2714_v12  ;;  %v1072_v61 = vadd.f32 %v2964_v47, %v2714_v12  ;;  %v1327_v47 = vadd.f32 %v2714_v12, %v2908_v30  ;;  %v3217_v30 = vld [vmem:[#allocation6_spill] sm:$0xff] }
 0x177   : > { %1571 = vxpose.xlu1.b32.cont [7/16] (narrow) %v1197_v38, 8  ;;  %1547 = vxpose.xlu0.b32.cont [15/16] (narrow) %v1157_v49, 8  ;;  %v2970_v45 = vpop.f32.mrb[62].mxu0  ;;  %v2986_v38 = vpop.f32.mrb[58].mxu1 }
 0x178   : > { %v2972_v4 = vpop.f32.mrb[63].mxu0  ;;  %v2992_v49 = vpop.f32.mrb[59].mxu1 }
 0x179   : > { %v1077_v2 = vadd.f32 %v2714_v12, %v2972_v4 }
 0x17b   : > { %1572 = vxpose.xlu1.b32.cont [8/16] (narrow) %v1202_v6, 8  ;;  %1548 = vxpose.xlu0.b32.end [16/16] (narrow) %v1162_v13, 8 }
 0x17f   : > { %1573 = vxpose.xlu1.b32.cont [9/16] (narrow) %v1207_v52, 8  ;;  %1469 = vxpose.xlu0.b32.start [1/16] (narrow) %v927_v54, 8  ;;  %v2998_v54 = vpop.f32.mrb[60].mxu1  ;;  %v1421_v56 = vpop.trf.xlu0 }
 0x180   : > { %v3004_v13 = vpop.f32.mrb[61].mxu1  ;;  %1661 = vst [vmem:[%s3033_s4] sm:$0xff] %v1421_v56 }
 0x181   : > { %v3010_v6 = vpop.f32.mrb[62].mxu1 }
 0x182   : > { %v3016_v52 = vpop.f32.mrb[63].mxu1 }
 0x183   : > { %1574 = vxpose.xlu1.b32.cont [10/16] (narrow) %v1212_v9, 8  ;;  %1470 = vxpose.xlu0.b32.cont [2/16] (narrow) %v932_v50, 8  ;;  %v962_v50 = vadd.f32 %v2842_v15, %v2714_v12  ;;  %v972_v15 = vadd.f32 %v2854_v22, %v2714_v12  ;;  %v1017_v9 = vadd.f32 %v2714_v12, %v2912_v17 }
 0x184   : > { %v1027_v22 = vadd.f32 %v2714_v12, %v2926_v32  ;;  %v987_v17 = vadd.f32 %v2714_v12, %v2878_v14  ;;  %v1002_v14 = vadd.f32 %v2886_v25, %v2714_v12  ;;  %v1247_v32 = vadd.f32 %v2714_v12, %v2818_v63 }
 0x185   : > { %v1252_v25 = vadd.f32 %v2816_v62, %v2714_v12  ;;  %v1257_v63 = vadd.f32 %v2714_v12, %v2829_v5  ;;  %v1267_v62 = vadd.f32 %v2714_v12, %v2840_v18  ;;  %v1272_v5 = vadd.f32 %v2836_v11, %v2714_v12 }
 0x186   : > { %v1282_v18 = vadd.f32 %v2846_v21, %v2714_v12  ;;  %v1082_v11 = vadd.f32 %v2970_v45, %v2714_v12  ;;  %v1332_v21 = vadd.f32 %v2904_v26, %v2714_v12  ;;  %v1337_v45 = vadd.f32 %v2714_v12, %v2924_v43  ;;  %v3221_v26 = vld [vmem:[#allocation8_spill] sm:$0xff] }
 0x187   : > { %1575 = vxpose.xlu1.b32.cont [11/16] (narrow) %v1217_v60, 8  ;;  %1471 = vxpose.xlu0.b32.cont [3/16] (narrow) %v937_v23, 8  ;;  %v982_v60 = vadd.f32 %v2864_v20, %v2714_v12  ;;  %v1022_v23 = vadd.f32 %v2910_v46, %v2714_v12  ;;  %v1037_v20 = vadd.f32 %v2714_v12, %v2932_v55 }
 0x188   : > { %v997_v46 = vadd.f32 %v2714_v12, %v2888_v36  ;;  %v1052_v36 = vadd.f32 %v2942_v42, %v2714_v12  ;;  %v1067_v42 = vadd.f32 %v2714_v12, %v2966_v3  ;;  %v1287_v3 = vadd.f32 %v2714_v12, %v2862_v57  ;;  %v3218_v57 = vld [vmem:[#allocation5_spill] sm:$0xff] }
 0x189   : > { %v1307_v43 = vadd.f32 %v2714_v12, %v3221_v26 }
 0x18b   : > { %1576 = vxpose.xlu1.b32.cont [12/16] (narrow) %v1222_v19, 8  ;;  %1472 = vxpose.xlu0.b32.cont [4/16] (narrow) %v942_v59, 8  ;;  %v1062_v59 = vadd.f32 %v2950_v40, %v2714_v12  ;;  %v1277_v40 = vadd.f32 %v2714_v12, %v2851_v31  ;;  %v1292_v31 = vadd.f32 %v2858_v53, %v2714_v12  ;;  %v3220_v53 = vld [vmem:[#allocation13_spill] sm:$0xff] }
 0x18c   : > { %v1297_v19 = vadd.f32 %v2714_v12, %v3217_v30 }
 0x18f   : > { %1577 = vxpose.xlu1.b32.cont [13/16] (narrow) %v1227_v33, 8  ;;  %1473 = vxpose.xlu0.b32.cont [5/16] (narrow) %v947_v1, 8  ;;  %v1302_v33 = vadd.f32 %v3218_v57, %v2714_v12  ;;  %v3219_v1 = vld [vmem:[#allocation11_spill] sm:$0xff] }
 0x193   : > { %1578 = vxpose.xlu1.b32.cont [14/16] (narrow) %v1232_v28, 8  ;;  %1474 = vxpose.xlu0.b32.cont [6/16] (narrow) %v952_v48, 8  ;;  %v1342_v48 = vadd.f32 %v3219_v1, %v2714_v12  ;;  %v1347_v28 = vadd.f32 %v2714_v12, %v3220_v53 }
 0x197   : > { %1579 = vxpose.xlu1.b32.cont [15/16] (narrow) %v1237_v44, 8  ;;  %1475 = vxpose.xlu0.b32.cont [7/16] (narrow) %v957_v10, 8  ;;  %v3222_v44 = vld [vmem:[#allocation7_spill] sm:$0xff] }
 0x198   : > { %v1312_v10 = vadd.f32 %v3222_v44, %v2714_v12 }
 0x19b   : > { %1580 = vxpose.xlu1.b32.end [16/16] (narrow) %v1242_v8, 8  ;;  %1476 = vxpose.xlu0.b32.cont [8/16] (narrow) %v962_v50, 8  ;;  %v3223_v50 = vld [vmem:[#allocation12_spill] sm:$0xff] }
 0x19c   : > { %v1352_v8 = vadd.f32 %v3223_v50, %v2714_v12 }
 0x19f   : > { %1501 = vxpose.xlu1.b32.start [1/16] (narrow) %v1007_v39, 8  ;;  %1477 = vxpose.xlu0.b32.cont [9/16] (narrow) %v967_v16, 8  ;;  %v1453_v51 = vpop.trf.xlu1  ;;  %v3224_v39 = vld [vmem:[#allocation15_spill] sm:$0xff]  ;;  %v3225_v16 = vld [vmem:[#allocation10_spill] sm:$0xff] }
 0x1a0   : > { %1662 = vst [vmem:[%s3033_s4 + $0x8] sm:$0xff] %v1453_v51  ;;  %v1357_v56 = vadd.f32 %v2714_v12, %v3224_v39  ;;  %v1317_v51 = vadd.f32 %v2714_v12, %v3225_v16 }
 0x1a3   : > { %1502 = vxpose.xlu1.b32.cont [2/16] (narrow) %v1012_v29, 8  ;;  %1478 = vxpose.xlu0.b32.cont [10/16] (narrow) %v972_v15, 8  ;;  %v3226_v15 = vld [vmem:[#allocation9_spill] sm:$0xff] }
 0x1a4   : > { %v1322_v29 = vadd.f32 %v3226_v15, %v2714_v12 }
 0x1a7   : > { %1503 = vxpose.xlu1.b32.cont [3/16] (narrow) %v1017_v9, 8  ;;  %1479 = vxpose.xlu0.b32.cont [11/16] (narrow) %v977_v41, 8  ;;  %v3227_v9 = vld [vmem:[#allocation14_spill] sm:$0xff] }
 0x1a8   : > { %v1362_v41 = vadd.f32 %v3227_v9, %v2714_v12 }
 0x1ab   : > { %1504 = vxpose.xlu1.b32.cont [4/16] (narrow) %v1022_v23, 8  ;;  %1480 = vxpose.xlu0.b32.cont [12/16] (narrow) %v982_v60, 8  ;;  %v1367_v60 = vadd.f32 %v2714_v12, %v2980_v0  ;;  %v1382_v0 = vadd.f32 %v2986_v38, %v2714_v12 }
 0x1af   : > { %1505 = vxpose.xlu1.b32.cont [5/16] (narrow) %v1027_v22, 8  ;;  %1481 = vxpose.xlu0.b32.cont [13/16] (narrow) %v987_v17, 8  ;;  %v1372_v22 = vadd.f32 %v2974_v58, %v2714_v12  ;;  %v1377_v17 = vadd.f32 %v2714_v12, %v2992_v49  ;;  %v1392_v58 = vadd.f32 %v2998_v54, %v2714_v12 }
 0x1b0   : > { %v1397_v49 = vadd.f32 %v2714_v12, %v3016_v52 }
 0x1b3   : > { %1506 = vxpose.xlu1.b32.cont [6/16] (narrow) %v1032_v7, 8  ;;  %1482 = vxpose.xlu0.b32.cont [14/16] (narrow) %v992_v24, 8  ;;  %v1387_v24 = vadd.f32 %v2714_v12, %v3004_v13  ;;  %v1402_v7 = vadd.f32 %v3010_v6, %v2714_v12 }
 0x1b7   : > { %1507 = vxpose.xlu1.b32.cont [7/16] (narrow) %v1037_v20, 8  ;;  %1483 = vxpose.xlu0.b32.cont [15/16] (narrow) %v997_v46, 8 }
 0x1bb   : > { %1508 = vxpose.xlu1.b32.cont [8/16] (narrow) %v1042_v27, 8  ;;  %1484 = vxpose.xlu0.b32.end [16/16] (narrow) %v1002_v14, 8 }
 0x1bf   : > { %1509 = vxpose.xlu1.b32.cont [9/16] (narrow) %v1047_v37, 8  ;;  %1597 = vxpose.xlu0.b32.start [1/16] (narrow) %v1247_v32, 8  ;;  %v1549_v55 = vpop.trf.xlu0 }
 0x1c0   : > { %1665 = vst [vmem:[%s3033_s4 + $0x20] sm:$0xff] %v1549_v55 }
 0x1c3   : > { %1510 = vxpose.xlu1.b32.cont [10/16] (narrow) %v1052_v36, 8  ;;  %1598 = vxpose.xlu0.b32.cont [2/16] (narrow) %v1252_v25, 8 }
 0x1c7   : > { %1511 = vxpose.xlu1.b32.cont [11/16] (narrow) %v1057_v35, 8  ;;  %1599 = vxpose.xlu0.b32.cont [3/16] (narrow) %v1257_v63, 8 }
 0x1cb   : > { %1512 = vxpose.xlu1.b32.cont [12/16] (narrow) %v1062_v59, 8  ;;  %1600 = vxpose.xlu0.b32.cont [4/16] (narrow) %v1262_v34, 8 }
 0x1cf   : > { %1513 = vxpose.xlu1.b32.cont [13/16] (narrow) %v1067_v42, 8  ;;  %1601 = vxpose.xlu0.b32.cont [5/16] (narrow) %v1267_v62, 8 }
 0x1d3   : > { %1514 = vxpose.xlu1.b32.cont [14/16] (narrow) %v1072_v61, 8  ;;  %1602 = vxpose.xlu0.b32.cont [6/16] (narrow) %v1272_v5, 8 }
 0x1d7   : > { %1515 = vxpose.xlu1.b32.cont [15/16] (narrow) %v1077_v2, 8  ;;  %1603 = vxpose.xlu0.b32.cont [7/16] (narrow) %v1277_v40, 8 }
 0x1db   : > { %1516 = vxpose.xlu1.b32.end [16/16] (narrow) %v1082_v11, 8  ;;  %1604 = vxpose.xlu0.b32.cont [8/16] (narrow) %v1282_v18, 8 }
 0x1df   : > { %1629 = vxpose.xlu1.b32.start [1/16] (narrow) %v1327_v47, 8  ;;  %1605 = vxpose.xlu0.b32.cont [9/16] (narrow) %v1287_v3, 8  ;;  %v1581_v4 = vpop.trf.xlu1 }
 0x1e0   : > { %1666 = vst [vmem:[%s3033_s4 + $0x28] sm:$0xff] %v1581_v4 }
 0x1e3   : > { %1630 = vxpose.xlu1.b32.cont [2/16] (narrow) %v1332_v21, 8  ;;  %1606 = vxpose.xlu0.b32.cont [10/16] (narrow) %v1292_v31, 8 }
 0x1e7   : > { %1631 = vxpose.xlu1.b32.cont [3/16] (narrow) %v1337_v45, 8  ;;  %1607 = vxpose.xlu0.b32.cont [11/16] (narrow) %v1297_v19, 8 }
 0x1eb   : > { %1632 = vxpose.xlu1.b32.cont [4/16] (narrow) %v1342_v48, 8  ;;  %1608 = vxpose.xlu0.b32.cont [12/16] (narrow) %v1302_v33, 8 }
 0x1ef   : > { %1633 = vxpose.xlu1.b32.cont [5/16] (narrow) %v1347_v28, 8  ;;  %1609 = vxpose.xlu0.b32.cont [13/16] (narrow) %v1307_v43, 8 }
 0x1f3   : > { %1634 = vxpose.xlu1.b32.cont [6/16] (narrow) %v1352_v8, 8  ;;  %1610 = vxpose.xlu0.b32.cont [14/16] (narrow) %v1312_v10, 8 }
 0x1f7   : > { %1635 = vxpose.xlu1.b32.cont [7/16] (narrow) %v1357_v56, 8  ;;  %1611 = vxpose.xlu0.b32.cont [15/16] (narrow) %v1317_v51, 8 }
 0x1fb   : > { %1636 = vxpose.xlu1.b32.cont [8/16] (narrow) %v1362_v41, 8  ;;  %1612 = vxpose.xlu0.b32.end [16/16] (narrow) %v1322_v29, 8 }
 0x1ff   : > { %1637 = vxpose.xlu1.b32.cont [9/16] (narrow) %v1367_v60, 8  ;;  %v1485_v23 = vpop.trf.xlu0 }
 0x200   : > { %1663 = vst [vmem:[%s3033_s4 + $0x10] sm:$0xff] %v1485_v23 }
 0x203   : > { %1638 = vxpose.xlu1.b32.cont [10/16] (narrow) %v1372_v22, 8 }
 0x207   : > { %1639 = vxpose.xlu1.b32.cont [11/16] (narrow) %v1377_v17, 8 }
 0x20b   : > { %1640 = vxpose.xlu1.b32.cont [12/16] (narrow) %v1382_v0, 8 }
 0x20f   : > { %1641 = vxpose.xlu1.b32.cont [13/16] (narrow) %v1387_v24, 8 }
 0x213   : > { %1642 = vxpose.xlu1.b32.cont [14/16] (narrow) %v1392_v58, 8 }
 0x217   : > { %1643 = vxpose.xlu1.b32.cont [15/16] (narrow) %v1397_v49, 8 }
 0x21b   : > { %1644 = vxpose.xlu1.b32.end [16/16] (narrow) %v1402_v7, 8 }
 0x21f   : > { %v1517_v38 = vpop.trf.xlu1 }
 0x220   : > { %1664 = vst [vmem:[%s3033_s4 + $0x18] sm:$0xff] %v1517_v38 }
 0x23f   : > { %v1613_v13 = vpop.trf.xlu0 }
 0x240   : > { %1667 = vst [vmem:[%s3033_s4 + $0x30] sm:$0xff] %v1613_v13 }
 0x25f   : > { %v1645_v54 = vpop.trf.xlu1 }
 0x260   : > { %1668 = vst [vmem:[%s3033_s4 + $0x38] sm:$0xff] %v1645_v54 }
 0x261   : > { %2305 = shalt.err (!%p2302_p3)
}
 0x262   : > { %s2306_s20 = scalar_lea.hbm %s3155_s9, 1024  ;;  %s2310_s26 = scalar_lea.hbm %s3203_s3, 2048 }
 0x263   : > { %p2307_p4 = scmp.ne.s32.totalorder %s3155_s9, %s2306_s20  ;;  %p2311_p9 = scmp.lt.u32.totalorder %s3155_s9, %s3203_s3 }
 0x264   : > { %p2312_p10 = scmp.lt.u32.totalorder %s2310_s26, %s2306_s20  ;;  %p2314_p12 = scmp.lt.u32.totalorder %s2306_s20, %s3155_s9 }
 0x265   : > { %p2308_p7 = pnand %p2307_p4, %p2415_p5 }
 0x266   : > { %p2313_p11 = por %p2312_p10, %p2311_p9 }
 0x267   : > { %p2309_p8 = pneg %p2308_p7 }
 0x268   : > { %p2315_p13 = por %p2314_p12, %p2313_p11 }
 0x26a   : > { %p2316_p0 = pnand %p2315_p13, %p2309_p8 }
 0x26c   : > { %2319 = shalt.err (!%p2316_p0)
}
 0x26d   : > { %2253 = dma.vmem_to_hbm [thread:$0]  (%p2415_p5), %s3157_s6, 1024, %s3155_s9, %s1670_s10  }
 0x26e PF: > { %p2259_p1 = scmp.ge.s32.totalorder %s2354_s15, 2  ;;  %s1696_s29 = sand.u32 1, %s2342_s12  }
 0x26f   : > { %s1697_s30 = scalar_lea.sflag [#allocation3], %s1696_s29 }
 0x270   : > { %p2256_p2 = pnand %p2259_p1, %p2419_p6 }
 0x272   : > { %2337 = dma.done.wait (!%p2256_p2), %s1697_s30, 1024  }
 0x273   : > { %2339 = vsyncadd (!%p2256_p2), %s1697_s30, 4294966272  ;;  %p13_p3 = scmp.ge.s32.totalorder %s2402_s18, 4   ;;  %s3228_s12 = smov %s2346_s13 }
 0x274   : > { %s3229_s13 = smov %s2350_s14  ;;  %s3230_s14 = smov %s2413_s21 }
 0x275   : > { %s3231_s15 = smov %s2402_s18  ;;  %15 = sbr.rel (!%p13_p3) target bundleno = 3 (0x3), region = 67 }
 0x27c   :  { %1702 = vsyncpa [#allocation3], 1 }
 0x27d   :  { %1704 = vsyncpa [#allocation3 + $0x1], 1 }

</bundles_post_ra>
